<compile_context>
chip_gen: v7x
topology: tpu7x:2x2x1
jax: 0.10.0
libtpu: 0.0.40
codegen_flags: <defaults>
</compile_context>

<pallas_src>
import functools
from math import sqrt

import jax
import jax.numpy as jnp
from jax.experimental import pallas as pl
from jax.experimental.pallas import tpu as pltpu


def _round_up(x, m):
    return ((x + m - 1) // m) * m


def _biaffine_kernel(x1_ref, x2_ref, wm_ref, wb_ref, rrep_ref, bpat_ref, s_ref,
                     o_ref, *, n_groups, group_width):
    f32, bf16 = jnp.float32, jnp.bfloat16

    # (1) affine[b, col] = sum_i x1a[b, i] * W[o*d2 + j, i]   (col packs (o, j))
    #     bias[0]'s ones-column is folded in as a broadcast row add (w_bias).
    x1 = x1_ref[...].astype(bf16)                                   # (TB, in1)
    affine = jnp.dot(x1, wm_ref[...], preferred_element_type=f32)   # (TB, NW)
    affine = affine + wb_ref[...]                                   # (1, NW) bcast

    # (2) Replicate x2 across the g segments of one 128-lane group on the MXU
    #     (constant 0/1 matrix); bias[1] lane comes from the constant pattern.
    x2 = x2_ref[...].astype(bf16)                                   # (TB, in2)
    x2g = jnp.dot(x2, rrep_ref[...], preferred_element_type=f32)    # (TB, GW)
    x2g = x2g + bpat_ref[...]                                       # (1, GW) bcast

    # (3) Per 128-lane group: f32 multiply (VPU), bf16 segment-sum matmul
    #     (MXU), f32 accumulation.  No full-width x2_tiled temp materialized.
    acc = jnp.zeros(o_ref.shape, dtype=f32)
    for grp in range(n_groups):
        lo = grp * group_width
        a_g = affine[:, lo:lo + group_width]                        # lane-aligned
        p_g = (a_g * x2g).astype(bf16)                              # (TB, GW)
        s_g = s_ref[lo:lo + group_width, :]                         # (GW, out_p)
        acc = acc + jnp.dot(p_g, s_g, preferred_element_type=f32)
    o_ref[...] = acc.astype(o_ref.dtype)


def prepare_biaffine_params(weight, in1_features, in2_features, out_features,
                            bias=(True, True, True)):
    """One-time weight-side preparation (hoisted out of the per-call path)."""
    b0, b1 = int(bias[0]), int(bias[1])
    d1 = in1_features + b0
    d2 = in2_features + b1
    assert weight.shape == (out_features * d2, d1), weight.shape

    # Segment packing: g segments of length d2 per 128-lane group.
    if d2 >= 128:
        g, gw = 1, _round_up(d2, 128)
    else:
        g, gw = 128 // d2, 128
    n_groups = -(-out_features // g)              # ceil
    nw = n_groups * gw                            # packed width of matmul-1
    out_p = _round_up(out_features, 128)          # lane-dense output width

    # W (out*d2, d1) -> packed (d1, NW): col = grp*gw + s*d2 + j, o = grp*g + s.
    w3 = jnp.transpose(weight.reshape(out_features, d2, d1), (2, 0, 1))
    w3 = jnp.pad(w3, ((0, 0), (0, n_groups * g - out_features), (0, 0)))
    w3 = w3.reshape(d1, n_groups, g * d2)
    w3 = jnp.pad(w3, ((0, 0), (0, 0), (0, gw - g * d2)))
    w_packed = w3.reshape(d1, nw)
    if b0:
        w_main = w_packed[:in1_features].astype(jnp.bfloat16)        # (in1, NW)
        w_bias = w_packed[in1_features:].astype(jnp.float32)         # (1, NW)
    else:
        w_main = w_packed.astype(jnp.bfloat16)
        w_bias = jnp.zeros((1, nw), jnp.float32)

    # Constant replication matrix: (x2 @ r_rep)[b, s*d2 + j] = x2[b, j]
    # for every segment s < g; bias[1] lane (j = d2-1) filled via bias_pat.
    col = jnp.arange(gw)
    seg, jj = col // d2, col % d2
    lane_ok = seg < g
    r_rep = ((lane_ok & (jj < in2_features))[None, :]
             & (jj[None, :] == jnp.arange(in2_features)[:, None])
             ).astype(jnp.bfloat16)                                  # (in2, GW)
    if b1:
        bias_pat = (lane_ok & (jj == d2 - 1)).astype(jnp.float32)[None, :]
    else:
        bias_pat = jnp.zeros((1, gw), jnp.float32)

    # Constant segment-sum matrix: S[grp*gw + s*d2 + j, o] = (grp*g + s == o).
    rcol = jnp.arange(nw)
    feat = (rcol // gw) * g + (rcol % gw) // d2
    rvalid = ((rcol % gw) < g * d2) & (feat < out_features)
    s_mat = (rvalid[:, None]
             & (feat[:, None] == jnp.arange(out_p)[None, :])
             ).astype(jnp.bfloat16)                                  # (NW, out_p)

    return dict(w_main=w_main, w_bias=w_bias, r_rep=r_rep, bias_pat=bias_pat,
                s_mat=s_mat, n_groups=n_groups, group_width=gw, out_p=out_p,
                out_features=out_features, in1=in1_features, in2=in2_features)


def biaffine_pallas(input1, input2, params):
    """input1: (B, in1), input2: (B, in2); returns (B, out_features)."""
    B = input1.shape[0]
    in1, in2 = params["in1"], params["in2"]
    assert input1.shape == (B, in1) and input2.shape == (B, in2)
    dtype = input1.dtype

    n_groups = params["n_groups"]
    gw = params["group_width"]
    nw = n_groups * gw
    out_p = params["out_p"]

    # Batch tiling: big tiles amortize the ~0.35us per-grid-step overhead and
    # fill the 256-wide MXU M dim on v6e/v7x; 128-row tiles already fill v5e.
    # NOTE: for very large out_features*d2, add an o-chunk grid axis so the
    # resident W/S fit v7x's 64 MiB VMEM.
    tb = min(256, _round_up(B, 8))
    bp = _round_up(B, tb)
    if bp != B:
        input1 = jnp.pad(input1, ((0, bp - B), (0, 0)))
        input2 = jnp.pad(input2, ((0, bp - B), (0, 0)))

    kernel = functools.partial(_biaffine_kernel,
                               n_groups=n_groups, group_width=gw)

    out_padded = pl.pallas_call(
        kernel,
        out_shape=jax.ShapeDtypeStruct((bp, out_p), dtype),
        grid_spec=pltpu.PrefetchScalarGridSpec(
            num_scalar_prefetch=0,
            grid=(bp // tb,),
            in_specs=[
                pl.BlockSpec((tb, in1), lambda b: (b, 0)),     # input1 tile (unpadded)
                pl.BlockSpec((tb, in2), lambda b: (b, 0)),     # input2 tile (unpadded)
                pl.BlockSpec((in1, nw), lambda b: (0, 0)),     # W_main, bf16, resident
                pl.BlockSpec((1, nw), lambda b: (0, 0)),       # bias[0] row (f32)
                pl.BlockSpec((in2, gw), lambda b: (0, 0)),     # x2 replication matrix
                pl.BlockSpec((1, gw), lambda b: (0, 0)),       # bias[1] lane pattern
                pl.BlockSpec((nw, out_p), lambda b: (0, 0)),   # segment-sum S, bf16
            ],
            out_specs=pl.BlockSpec((tb, out_p), lambda b: (b, 0)),
        ),
        compiler_params=pltpu.CompilerParams(
            dimension_semantics=("parallel",),
            # Explicit: above v5e's 16 MiB scoped default, below v7x physical.
            vmem_limit_bytes=32 * 1024 * 1024,
        ),
    )(input1, input2, params["w_main"], params["w_bias"], params["r_rep"],
      params["bias_pat"], params["s_mat"])

    return out_padded[:B, :params["out_features"]]


def _reference(input1, input2, weight, out_features, bias=(True, True, True)):
    B = input1.shape[0]
    dtype = input1.dtype
    if bias[0]:
        input1 = jnp.concatenate([input1, jnp.ones((B, 1), dtype)], axis=1)
    if bias[1]:
        input2 = jnp.concatenate([input2, jnp.ones((B, 1), dtype)], axis=1)
    d2 = input2.shape[1]
    affine = jnp.dot(input1, weight.T, precision="highest")
    affine = affine.reshape(B, out_features, d2)
    return jnp.einsum("boj,bj->bo", affine, input2, precision="highest")


if __name__ == "__main__":
    # Small shapes consistent with the module: batch=2, in1=in2=32, out=16.
    B, in1_features, in2_features, out_features = 2, 32, 32, 16
    bias = (True, True, True)        # bias[2] does not affect the forward pass
    d1 = in1_features + int(bias[0])
    d2 = in2_features + int(bias[1])

    key = jax.random.PRNGKey(0)
    k1, k2, kw = jax.random.split(key, 3)
    x1 = jax.random.normal(k1, (B, in1_features), dtype=jnp.float32)
    x2 = jax.random.normal(k2, (B, in2_features), dtype=jnp.float32)

    # nn.Linear(in=d1, out=out*d2, bias=False) style deterministic weight.
    bound = 1.0 / sqrt(d1)
    weight = jax.random.uniform(kw, (out_features * d2, d1),
                                minval=-bound, maxval=bound, dtype=jnp.float32)

    params = prepare_biaffine_params(weight, in1_features, in2_features,
                                     out_features, bias)
    out = biaffine_pallas(x1, x2, params)
    out = jax.block_until_ready(out)

    ref = _reference(x1, x2, weight, out_features, bias)
    assert out.shape == (B, out_features)
    # bf16 MXU operands with f32 accumulation: expect ~1e-2 relative accuracy.
    max_err = float(jnp.max(jnp.abs(out - ref)))
    assert jnp.allclose(out, ref, atol=1e-1, rtol=1e-1), max_err

    print("KERNEL_OK")
</pallas_src>

<mosaic_0001>
module attributes {stable_mosaic.version = 11 : i64} {
  func.func @_biaffine_kernel(%arg0: i32, %arg1: memref<8x32xf32, #tpu.memory_space<vmem>>, %arg2: memref<8x32xf32, #tpu.memory_space<vmem>>, %arg3: memref<32x768xbf16, #tpu.memory_space<vmem>>, %arg4: memref<1x768xf32, #tpu.memory_space<vmem>>, %arg5: memref<32x128xbf16, #tpu.memory_space<vmem>>, %arg6: memref<1x128xf32, #tpu.memory_space<vmem>>, %arg7: memref<768x128xbf16, #tpu.memory_space<vmem>>, %arg8: memref<8x128xf32, #tpu.memory_space<vmem>>) attributes {dimension_semantics = [#tpu.dimension_semantics<parallel>], iteration_bounds = array<i64: 1>, scalar_prefetch = 0 : i64, scratch_operands = 0 : i64, tpu.core_type = #tpu.core_type<tc>, window_params = [{transform_indices = @transform_0, window_bounds = array<i64: 8, 32>}, {transform_indices = @transform_1, window_bounds = array<i64: 8, 32>}, {pipeline_mode = #tpu.pipeline_mode<synchronous>, transform_indices = @transform_2, window_bounds = array<i64: 32, 768>}, {pipeline_mode = #tpu.pipeline_mode<synchronous>, transform_indices = @transform_3, window_bounds = array<i64: 1, 768>}, {pipeline_mode = #tpu.pipeline_mode<synchronous>, transform_indices = @transform_4, window_bounds = array<i64: 32, 128>}, {pipeline_mode = #tpu.pipeline_mode<synchronous>, transform_indices = @transform_5, window_bounds = array<i64: 1, 128>}, {pipeline_mode = #tpu.pipeline_mode<synchronous>, transform_indices = @transform_6, window_bounds = array<i64: 768, 128>}, {transform_indices = @transform_7, window_bounds = array<i64: 8, 128>}]} {
    %c0 = arith.constant 0 : index
    %c0_0 = arith.constant 0 : index
    %0 = vector.load %arg1[%c0, %c0_0] : memref<8x32xf32, #tpu.memory_space<vmem>>, vector<8x32xf32>
    %1 = arith.truncf %0 : vector<8x32xf32> to vector<8x32xbf16>
    %c0_1 = arith.constant 0 : index
    %c0_2 = arith.constant 0 : index
    %2 = vector.load %arg3[%c0_1, %c0_2] : memref<32x768xbf16, #tpu.memory_space<vmem>>, vector<32x768xbf16>
    %cst = arith.constant dense<0.000000e+00> : vector<8x768xf32>
    %3 = tpu.matmul %1, %2, %cst {dimension_numbers = #tpu.dot_dimension_numbers<[1], [0], [0], [1], [0, 0, 1, 1], [], []>} : vector<8x32xbf16>, vector<32x768xbf16>, vector<8x768xf32> -> vector<8x768xf32>
    %c0_3 = arith.constant 0 : index
    %c0_4 = arith.constant 0 : index
    %4 = vector.load %arg4[%c0_3, %c0_4] : memref<1x768xf32, #tpu.memory_space<vmem>>, vector<1x768xf32>
    %5 = vector.broadcast %4 : vector<1x768xf32> to vector<8x768xf32>
    %6 = arith.addf %3, %5 : vector<8x768xf32>
    %c0_5 = arith.constant 0 : index
    %c0_6 = arith.constant 0 : index
    %7 = vector.load %arg2[%c0_5, %c0_6] : memref<8x32xf32, #tpu.memory_space<vmem>>, vector<8x32xf32>
    %8 = arith.truncf %7 : vector<8x32xf32> to vector<8x32xbf16>
    %c0_7 = arith.constant 0 : index
    %c0_8 = arith.constant 0 : index
    %9 = vector.load %arg5[%c0_7, %c0_8] : memref<32x128xbf16, #tpu.memory_space<vmem>>, vector<32x128xbf16>
    %cst_9 = arith.constant dense<0.000000e+00> : vector<8x128xf32>
    %10 = tpu.matmul %8, %9, %cst_9 {dimension_numbers = #tpu.dot_dimension_numbers<[1], [0], [0], [1], [0, 0, 1, 1], [], []>} : vector<8x32xbf16>, vector<32x128xbf16>, vector<8x128xf32> -> vector<8x128xf32>
    %c0_10 = arith.constant 0 : index
    %c0_11 = arith.constant 0 : index
    %11 = vector.load %arg6[%c0_10, %c0_11] : memref<1x128xf32, #tpu.memory_space<vmem>>, vector<1x128xf32>
    %12 = vector.broadcast %11 : vector<1x128xf32> to vector<8x128xf32>
    %13 = arith.addf %10, %12 : vector<8x128xf32>
    %cst_12 = arith.constant 0.000000e+00 : f32
    %14 = vector.broadcast %cst_12 : f32 to vector<8x128xf32>
    %15 = vector.extract_strided_slice %6 {offsets = [0, 0], sizes = [8, 128], strides = [1, 1]} : vector<8x768xf32> to vector<8x128xf32>
    %16 = arith.mulf %15, %13 : vector<8x128xf32>
    %17 = arith.truncf %16 : vector<8x128xf32> to vector<8x128xbf16>
    %c0_13 = arith.constant 0 : index
    %c0_14 = arith.constant 0 : index
    %18 = vector.load %arg7[%c0_13, %c0_14] : memref<768x128xbf16, #tpu.memory_space<vmem>>, vector<128x128xbf16>
    %cst_15 = arith.constant dense<0.000000e+00> : vector<8x128xf32>
    %19 = tpu.matmul %17, %18, %cst_15 {dimension_numbers = #tpu.dot_dimension_numbers<[1], [0], [0], [1], [0, 0, 1, 1], [], []>} : vector<8x128xbf16>, vector<128x128xbf16>, vector<8x128xf32> -> vector<8x128xf32>
    %20 = arith.addf %14, %19 : vector<8x128xf32>
    %21 = vector.extract_strided_slice %6 {offsets = [0, 128], sizes = [8, 128], strides = [1, 1]} : vector<8x768xf32> to vector<8x128xf32>
    %22 = arith.mulf %21, %13 : vector<8x128xf32>
    %23 = arith.truncf %22 : vector<8x128xf32> to vector<8x128xbf16>
    %c128 = arith.constant 128 : index
    %c0_16 = arith.constant 0 : index
    %24 = vector.load %arg7[%c128, %c0_16] : memref<768x128xbf16, #tpu.memory_space<vmem>>, vector<128x128xbf16>
    %cst_17 = arith.constant dense<0.000000e+00> : vector<8x128xf32>
    %25 = tpu.matmul %23, %24, %cst_17 {dimension_numbers = #tpu.dot_dimension_numbers<[1], [0], [0], [1], [0, 0, 1, 1], [], []>} : vector<8x128xbf16>, vector<128x128xbf16>, vector<8x128xf32> -> vector<8x128xf32>
    %26 = arith.addf %20, %25 : vector<8x128xf32>
    %27 = vector.extract_strided_slice %6 {offsets = [0, 256], sizes = [8, 128], strides = [1, 1]} : vector<8x768xf32> to vector<8x128xf32>
    %28 = arith.mulf %27, %13 : vector<8x128xf32>
    %29 = arith.truncf %28 : vector<8x128xf32> to vector<8x128xbf16>
    %c256 = arith.constant 256 : index
    %c0_18 = arith.constant 0 : index
    %30 = vector.load %arg7[%c256, %c0_18] : memref<768x128xbf16, #tpu.memory_space<vmem>>, vector<128x128xbf16>
    %cst_19 = arith.constant dense<0.000000e+00> : vector<8x128xf32>
    %31 = tpu.matmul %29, %30, %cst_19 {dimension_numbers = #tpu.dot_dimension_numbers<[1], [0], [0], [1], [0, 0, 1, 1], [], []>} : vector<8x128xbf16>, vector<128x128xbf16>, vector<8x128xf32> -> vector<8x128xf32>
    %32 = arith.addf %26, %31 : vector<8x128xf32>
    %33 = vector.extract_strided_slice %6 {offsets = [0, 384], sizes = [8, 128], strides = [1, 1]} : vector<8x768xf32> to vector<8x128xf32>
    %34 = arith.mulf %33, %13 : vector<8x128xf32>
    %35 = arith.truncf %34 : vector<8x128xf32> to vector<8x128xbf16>
    %c384 = arith.constant 384 : index
    %c0_20 = arith.constant 0 : index
    %36 = vector.load %arg7[%c384, %c0_20] : memref<768x128xbf16, #tpu.memory_space<vmem>>, vector<128x128xbf16>
    %cst_21 = arith.constant dense<0.000000e+00> : vector<8x128xf32>
    %37 = tpu.matmul %35, %36, %cst_21 {dimension_numbers = #tpu.dot_dimension_numbers<[1], [0], [0], [1], [0, 0, 1, 1], [], []>} : vector<8x128xbf16>, vector<128x128xbf16>, vector<8x128xf32> -> vector<8x128xf32>
    %38 = arith.addf %32, %37 : vector<8x128xf32>
    %39 = vector.extract_strided_slice %6 {offsets = [0, 512], sizes = [8, 128], strides = [1, 1]} : vector<8x768xf32> to vector<8x128xf32>
    %40 = arith.mulf %39, %13 : vector<8x128xf32>
    %41 = arith.truncf %40 : vector<8x128xf32> to vector<8x128xbf16>
    %c512 = arith.constant 512 : index
    %c0_22 = arith.constant 0 : index
    %42 = vector.load %arg7[%c512, %c0_22] : memref<768x128xbf16, #tpu.memory_space<vmem>>, vector<128x128xbf16>
    %cst_23 = arith.constant dense<0.000000e+00> : vector<8x128xf32>
    %43 = tpu.matmul %41, %42, %cst_23 {dimension_numbers = #tpu.dot_dimension_numbers<[1], [0], [0], [1], [0, 0, 1, 1], [], []>} : vector<8x128xbf16>, vector<128x128xbf16>, vector<8x128xf32> -> vector<8x128xf32>
    %44 = arith.addf %38, %43 : vector<8x128xf32>
    %45 = vector.extract_strided_slice %6 {offsets = [0, 640], sizes = [8, 128], strides = [1, 1]} : vector<8x768xf32> to vector<8x128xf32>
    %46 = arith.mulf %45, %13 : vector<8x128xf32>
    %47 = arith.truncf %46 : vector<8x128xf32> to vector<8x128xbf16>
    %c640 = arith.constant 640 : index
    %c0_24 = arith.constant 0 : index
    %48 = vector.load %arg7[%c640, %c0_24] : memref<768x128xbf16, #tpu.memory_space<vmem>>, vector<128x128xbf16>
    %cst_25 = arith.constant dense<0.000000e+00> : vector<8x128xf32>
    %49 = tpu.matmul %47, %48, %cst_25 {dimension_numbers = #tpu.dot_dimension_numbers<[1], [0], [0], [1], [0, 0, 1, 1], [], []>} : vector<8x128xbf16>, vector<128x128xbf16>, vector<8x128xf32> -> vector<8x128xf32>
    %50 = arith.addf %44, %49 : vector<8x128xf32>
    %c0_26 = arith.constant 0 : index
    %c0_27 = arith.constant 0 : index
    %51 = vector.load %arg8[%c0_26, %c0_27] : memref<8x128xf32, #tpu.memory_space<vmem>>, vector<8x128xf32>
    tpu.vector_store %arg8[%c0_26, %c0_27], %50 {strides = array<i32>} : memref<8x128xf32, #tpu.memory_space<vmem>>, vector<8x128xf32>,
    return
  }
  func.func @transform_0(%arg0: i32) -> (i32, i32) {
    %c0_i32 = arith.constant 0 : i32
    %c0_i32_0 = arith.constant 0 : i32
    return %arg0, %c0_i32 : i32, i32
  }
  func.func @transform_1(%arg0: i32) -> (i32, i32) {
    %c0_i32 = arith.constant 0 : i32
    %c0_i32_0 = arith.constant 0 : i32
    return %arg0, %c0_i32 : i32, i32
  }
  func.func @transform_2(%arg0: i32) -> (i32, i32) {
    %c0_i32 = arith.constant 0 : i32
    %c0_i32_0 = arith.constant 0 : i32
    %c0_i32_1 = arith.constant 0 : i32
    return %c0_i32, %c0_i32_0 : i32, i32
  }
  func.func @transform_3(%arg0: i32) -> (i32, i32) {
    %c0_i32 = arith.constant 0 : i32
    %c0_i32_0 = arith.constant 0 : i32
    %c0_i32_1 = arith.constant 0 : i32
    return %c0_i32, %c0_i32_0 : i32, i32
  }
  func.func @transform_4(%arg0: i32) -> (i32, i32) {
    %c0_i32 = arith.constant 0 : i32
    %c0_i32_0 = arith.constant 0 : i32
    %c0_i32_1 = arith.constant 0 : i32
    return %c0_i32, %c0_i32_0 : i32, i32
  }
  func.func @transform_5(%arg0: i32) -> (i32, i32) {
    %c0_i32 = arith.constant 0 : i32
    %c0_i32_0 = arith.constant 0 : i32
    %c0_i32_1 = arith.constant 0 : i32
    return %c0_i32, %c0_i32_0 : i32, i32
  }
  func.func @transform_6(%arg0: i32) -> (i32, i32) {
    %c0_i32 = arith.constant 0 : i32
    %c0_i32_0 = arith.constant 0 : i32
    %c0_i32_1 = arith.constant 0 : i32
    return %c0_i32, %c0_i32_0 : i32, i32
  }
  func.func @transform_7(%arg0: i32) -> (i32, i32) {
    %c0_i32 = arith.constant 0 : i32
    %c0_i32_0 = arith.constant 0 : i32
    return %arg0, %c0_i32 : i32, i32
  }
}

</mosaic_0001>

<bundles_post_ra>
// kernel: tpu_custom_call.1
= control target key start
LH: loop header
LB: loop body
LE: loop exit
PB: predicated region body
PF: predicated region fallthrough
CT: control target
= control target key end

     0   :  { %12 = vsyncpa [#allocation3], 0  ;;  %s1784_s0 = inlined_call_operand.hbm [shape: f32[8,32], index: 0, kind: input, shape index: {}]   ;;  %s1785_s1 = inlined_call_operand.hbm [shape: f32[8,32], index: 1, kind: input, shape index: {}]   ;;  %s1786_s2 = inlined_call_operand.hbm [shape: bf16[32,768], index: 2, kind: input, shape index: {}]   ;;  %s1787_s3 = inlined_call_operand.vmem [shape: f32[1,768], index: 3, kind: input, shape index: {}]   ;;  %s1788_s4 = inlined_call_operand.hbm [shape: bf16[32,128], index: 4, kind: input, shape index: {}]   ;;  %s1789_s5 = inlined_call_operand.vmem [shape: f32[1,128], index: 5, kind: input, shape index: {}]   ;;  %s1790_s6 = inlined_call_operand.hbm [shape: bf16[768,128], index: 6, kind: input, shape index: {}]   ;;  %s1791_s7 = inlined_call_operand.hbm [shape: f32[8,128], index: 7, kind: output, shape index: {}]  }
   0x1   :  { %13 = vsyncpa [#allocation6], 0 }
   0x2   :  { %14 = vsyncpa [#allocation9], 0 }
   0x3   :  { %15 = vsyncpa [#allocation4], 0  ;;  %s1541_s24 = smov [#allocation5]   ;;  %s1542_s26 = smov [#allocation8]  }
   0x4   :  { %s32_s25 = sshll.u32 %s1541_s24, 4  ;;  %s55_s27 = sshll.u32 %s1542_s26, 4  ;;  %s33_s25 = int_to_ptr.vmem [resolvable:$true] %s32_s25  ;;  %s1594_s27 = int_to_ptr.vmem [resolvable:$true] %s55_s27 }
   0x5   :  { %s1401_s30 = scalar_lea.hbm %s1785_s1, 128 }
   0x6   :  { %p1402_p0 = scmp.ne.s32.totalorder %s1785_s1, %s1401_s30  ;;  %p1405_p1 = scmp.lt.u32.totalorder %s1401_s30, %s1785_s1 }
   0x8   :  { %p1407_p2 = pnand %p1405_p1, %p1402_p0 }
   0xa   :  { %1410 = shalt.err (!%p1407_p2)
}
   0xb   :  { %s1411_s12 = scalar_lea.vmem %s33_s25, 128  ;;  %p1416_p4 = scmp.lt.s32.totalorder %s33_s25, %s33_s25 }
   0xc   :  { %p1412_p3 = scmp.ne.s32.totalorder %s33_s25, %s1411_s12  ;;  %p1417_p5 = scmp.lt.s32.totalorder %s1411_s12, %s1411_s12 }
   0xe   :  { %p1418_p6 = por %p1417_p5, %p1416_p4 }
  0x10   :  { %p1419_p7 = pnand %p1418_p6, %p1412_p3 }
  0x12   :  { %1422 = shalt.err (!%p1419_p7)
}
  0x13   :  { %35 = dma.hbm_to_vmem [thread:$0]  %s1785_s1, 128, %s33_s25, [#allocation6]  }
  0x14   :  { %s1423_s17 = scalar_lea.hbm %s1788_s4, 256 }
  0x15   :  { %p1424_p8 = scmp.ne.s32.totalorder %s1788_s4, %s1423_s17  ;;  %p1427_p9 = scmp.lt.u32.totalorder %s1423_s17, %s1788_s4 }
  0x17   :  { %p1429_p10 = pnand %p1427_p9, %p1424_p8 }
  0x19   :  { %1432 = shalt.err (!%p1429_p10)
}
  0x1a   :  { %s1433_s22 = scalar_lea.vmem %s1594_s27, 256  ;;  %p1438_p12 = scmp.lt.s32.totalorder %s1594_s27, %s1594_s27 }
  0x1b   :  { %p1434_p11 = scmp.ne.s32.totalorder %s1594_s27, %s1433_s22  ;;  %p1439_p13 = scmp.lt.s32.totalorder %s1433_s22, %s1433_s22 }
  0x1d   :  { %p1440_p0 = por %p1439_p13, %p1438_p12 }
  0x1f   :  { %p1441_p1 = pnand %p1440_p0, %p1434_p11 }
  0x21   :  { %1444 = shalt.err (!%p1441_p1)
}
  0x22   :  { %s1543_s1 = smov 64   ;;  %s1544_s23 = smov 4  }
  0x23   :  { %61 = dma.hbm_to_vmem [thread:$0]  %s1788_s4, 256, %s1594_s27, [#allocation9], %s1543_s1, %s1543_s1, %s1544_s23  }
  0x24   :  { %s1545_s26 = smov [#allocation2]   ;;  %s1546_s29 = smov [#allocation7]  }
  0x25   :  { %s22_s28 = sshll.u32 %s1545_s26, 4  ;;  %s41_s30 = sshll.u32 %s1546_s29, 4  ;;  %s23_s28 = int_to_ptr.vmem [resolvable:$true] %s22_s28  ;;  %s1628_s30 = int_to_ptr.vmem [resolvable:$true] %s41_s30 }
  0x26   :  { %s1445_s10 = scalar_lea.hbm %s1784_s0, 128 }
  0x27   :  { %p1446_p2 = scmp.ne.s32.totalorder %s1784_s0, %s1445_s10  ;;  %p1449_p3 = scmp.lt.u32.totalorder %s1445_s10, %s1784_s0 }
  0x29   :  { %p1451_p4 = pnand %p1449_p3, %p1446_p2 }
  0x2b   :  { %1454 = shalt.err (!%p1451_p4)
}
  0x2c   :  { %s1455_s4 = scalar_lea.vmem %s23_s28, 128  ;;  %p1460_p6 = scmp.lt.s32.totalorder %s23_s28, %s23_s28 }
  0x2d   :  { %p1456_p5 = scmp.ne.s32.totalorder %s23_s28, %s1455_s4  ;;  %p1461_p7 = scmp.lt.s32.totalorder %s1455_s4, %s1455_s4 }
  0x2f   :  { %p1462_p8 = por %p1461_p7, %p1460_p6 }
  0x31   :  { %p1463_p9 = pnand %p1462_p8, %p1456_p5 }
  0x33   :  { %1466 = shalt.err (!%p1463_p9)
}
  0x34   :  { %25 = dma.hbm_to_vmem [thread:$0]  %s1784_s0, 128, %s23_s28, [#allocation3]  }
  0x35   :  { %s1467_s18 = scalar_lea.hbm %s1786_s2, 1536 }
  0x36   :  { %p1468_p10 = scmp.ne.s32.totalorder %s1786_s2, %s1467_s18  ;;  %p1471_p11 = scmp.lt.u32.totalorder %s1467_s18, %s1786_s2 }
  0x38   :  { %p1473_p12 = pnand %p1471_p11, %p1468_p10 }
  0x3a   :  { %1476 = shalt.err (!%p1473_p12)
}
  0x3b   :  { %s1477_s24 = scalar_lea.vmem %s1628_s30, 1536  ;;  %p1482_p0 = scmp.lt.s32.totalorder %s1628_s30, %s1628_s30 }
  0x3c   :  { %p1478_p13 = scmp.ne.s32.totalorder %s1628_s30, %s1477_s24  ;;  %p1483_p1 = scmp.lt.s32.totalorder %s1477_s24, %s1477_s24 }
  0x3e   :  { %p1484_p2 = por %p1483_p1, %p1482_p0 }
  0x40   :  { %p1485_p3 = pnand %p1484_p2, %p1478_p13 }
  0x42   :  { %1488 = shalt.err (!%p1485_p3)
}
  0x43   :  { %s1547_s0 = smov 384   ;;  %s1548_s25 = smov 24  }
  0x44   :  { %47 = dma.hbm_to_vmem [thread:$0]  %s1786_s2, 1536, %s1628_s30, [#allocation6], %s1547_s0, %s1547_s0, %s1548_s25  }
  0x45   :  { %s1549_s29 = smov [#allocation10]   ;;  %s1489_s11 = scalar_lea.hbm %s1790_s6, 6144 }
  0x46   :  { %s69_s8 = sshll.u32 %s1549_s29, 4  ;;  %p1490_p4 = scmp.ne.s32.totalorder %s1790_s6, %s1489_s11  ;;  %s70_s8 = int_to_ptr.vmem [resolvable:$true] %s69_s8 }
  0x47   :  { %p1493_p5 = scmp.lt.u32.totalorder %s1489_s11, %s1790_s6 }
  0x49   :  { %p1495_p6 = pnand %p1493_p5, %p1490_p4 }
  0x4b   :  { %1498 = shalt.err (!%p1495_p6)
}
  0x4c   :  { %s1499_s27 = scalar_lea.vmem %s70_s8, 6144  ;;  %p1504_p8 = scmp.lt.s32.totalorder %s70_s8, %s70_s8 }
  0x4d   :  { %p1500_p7 = scmp.ne.s32.totalorder %s70_s8, %s1499_s27  ;;  %p1505_p9 = scmp.lt.s32.totalorder %s1499_s27, %s1499_s27 }
  0x4f   :  { %p1506_p10 = por %p1505_p9, %p1504_p8 }
  0x51   :  { %p1507_p11 = pnand %p1506_p10, %p1500_p7 }
  0x53   :  { %1510 = shalt.err (!%p1507_p11)
}
  0x54   :  { %75 = dma.hbm_to_vmem [thread:$0]  %s1790_s6, 6144, %s70_s8, [#allocation9], %s1543_s1, %s1543_s1, %s1544_s23  }
  0x55   :  { %1533 = dma.done.wait [#allocation3], 128  }
  0x56   :  { %1534 = vsyncadd [#allocation3], 4294967168 }
  0x57   :  { %1535 = dma.done.wait [#allocation6], 1664  }
  0x58   :  { %1536 = vsyncadd [#allocation6], 4294965632 }
  0x59   :  { %1537 = dma.done.wait [#allocation9], 6400  }
  0x5a   :  { %1538 = vsyncadd [#allocation9], 4294960896  ;;  %v1550_v0 = vmov 0   ;;  %v1333_v1 = vld [vmem:[#allocation7 + $0x4] ss:$24 sps:$4 sm:$0xff]   ;;  %v92_v9 = vld [vmem:[#allocation2] sm:$0xff]  ;;  %v108_v16 = vlaneseq }
  0x5b   :  { %234 = vmatprep.mubr.bf16.mxu0 %v1550_v0  ;;  %275 = vmatprep.mubr.bf16.mxu1 %v1550_v0  ;;  %v1335_v2 = vld [vmem:[#allocation7 + $0xc] ss:$24 sps:$4 sm:$0xff]   ;;  %v1337_v3 = vld [vmem:[#allocation7] ss:$24 sps:$4 sm:$0xff]   ;;  %v1341_v6 = vld [vmem:[#allocation7 + $0x3c] ss:$24 sps:$4 sm:$0xff]   ;;  %v93_v11 = vpack.c.bf16 %v92_v9, %v92_v9 }
  0x5c   :  { %202 = vmatprep.subr.bf16.mxu0 %v1333_v1  ;;  %v1338_v4 = vld [vmem:[#allocation7 + $0x8] ss:$24 sps:$4 sm:$0xff]   ;;  %243 = vmatprep.subr.bf16.mxu1 %v1335_v2  ;;  %v1339_v5 = vld [vmem:[#allocation7 + $0x34] ss:$24 sps:$4 sm:$0xff]   ;;  %v1344_v8 = vld [vmem:[#allocation7 + $0x38] ss:$24 sps:$4 sm:$0xff]  }
  0x5d   :  { %203 = vmatpush1.bf16.msra.mxu0 %v1337_v3  ;;  %244 = vmatpush1.bf16.msra.mxu1 %v1338_v4  ;;  %v1343_v7 = vld [vmem:[#allocation7 + $0x30] ss:$24 sps:$4 sm:$0xff]   ;;  %v1347_v10 = vld [vmem:[#allocation7 + $0x14] ss:$24 sps:$4 sm:$0xff]   ;;  %vm198_vm0 = vcmask 261120   ;;  %v1348_v13 = vld [vmem:[#allocation8] sm:$0xff]  }
  0x5e   :  { %204 = vmatprep.subr.bf16.mxu0 %v1339_v5  ;;  %245 = vmatprep.subr.bf16.mxu1 %v1341_v6  ;;  %v1345_v12 = vld [vmem:[#allocation7 + $0x10] ss:$24 sps:$4 sm:$0xff]   ;;  %v1551_v14 = vmov 0.0   ;;  %v1351_v15 = vld [vmem:[#allocation7 + $0x44] ss:$24 sps:$4 sm:$0xff]   ;;  %v1678_v20 = vshrl.u32 %v108_v16, 7 }
  0x5f   :  { %v1349_v17 = vld [vmem:[#allocation7 + $0x40] ss:$24 sps:$4 sm:$0xff]   ;;  %v1352_v18 = vld [vmem:[#allocation8 + $0x8] sm:$0xff]   ;;  %vm1552_vm1 = vmmov 0   ;;  %v1353_v22 = vld [vmem:[#allocation10 + $0x40] sm:$0xff]  }
  0x60   :  { %v325_v19 = vld [vmem:[#allocation5] sm:$0xff]  ;;  %v1354_v23 = vld [vmem:[#allocation10 + $0xc0] sm:$0xff]   ;;  %v118_v24 = vsub.s32 2, %v1678_v20  ;;  %v1357_v29 = vld [vmem:[#allocation10 + $0x50] sm:$0xff]   ;;  %v130_v39 = vsub.s32 5, %v1678_v20  ;;  %v110_v43 = vsub.s32 0, %v1678_v20 }
  0x61   :  { %205 = vmatpush1.bf16.msra.mxu0 %v1343_v7  ;;  %246 = vmatpush1.bf16.msra.mxu1 %v1344_v8  ;;  %v326_v21 = vpack.c.bf16 %v325_v19, %v325_v19  ;;  %v1355_v25 = vld [vmem:[#allocation10 + $0x48] sm:$0xff]   ;;  %v1690_v27 = vld [vmem:[%s1787_s3] sm:$0x3f]  ;;  %v1358_v30 = vld [vmem:[#allocation10 + $0xd0] sm:$0xff]   ;;  %v114_v44 = vsub.s32 1, %v1678_v20  ;;  %v122_v48 = vsub.s32 3, %v1678_v20 }
  0x62   :  { %284 = vmatprep.subr.bf16.mxu0 %v1347_v10  ;;  %1175 = vmatprep.subr.bf16.mxu1 %v1551_v14  ;;  %v1356_v26 = vld [vmem:[#allocation10 + $0xc8] sm:$0xff]   ;;  %v119_v28 = vrot.slane %v1690_v27, %v118_v24  ;;  %v1359_v31 = vld [vmem:[#allocation10 + $0x58] sm:$0xff]   ;;  %v1361_v33 = vld [vmem:[#allocation10 + $0x60] sm:$0xff]   ;;  %v131_v40 = vrot.slane %v1690_v27, %v130_v39  ;;  %v126_v51 = vsub.s32 4, %v1678_v20  ;;  %v111_v55 = vrot.slane %v1690_v27, %v110_v43 }
  0x63   :  { %v1360_v32 = vld [vmem:[#allocation10 + $0xd8] sm:$0xff]   ;;  %v1362_v34 = vld [vmem:[#allocation10 + $0xe0] sm:$0xff]   ;;  %v1363_v35 = vld [vmem:[#allocation10 + $0x68] sm:$0xff]   ;;  %v115_v56 = vrot.slane %v1690_v27, %v114_v44  ;;  %v123_v58 = vrot.slane %v1690_v27, %v122_v48 }
  0x64   :  { %1063 = vmatmul.mubr.msk.bf16.vlgmr.msra.gmra.mrb[0].mxu0 %vm198_vm0, %v93_v11  ;;  %1064 = vmatmul.mubr.msk.bf16.vlgmr.msra.gmra.mrb[0].mxu1 %vm198_vm0, %v93_v11  ;;  %v1364_v36 = vld [vmem:[#allocation10 + $0xe8] sm:$0xff]   ;;  %v1365_v37 = vld [vmem:[#allocation10 + $0x70] sm:$0xff]   ;;  %v1367_v41 = vld [vmem:[#allocation10 + $0x78] sm:$0xff]   ;;  %v127_v59 = vrot.slane %v1690_v27, %v126_v51 }
  0x65   :  { %285 = vmatpush1.bf16.msra.mxu0 %v1345_v12  ;;  %1176 = vmatpush3.bf16.msra.mxu1 %v1348_v13  ;;  %v1366_v38 = vld [vmem:[#allocation10 + $0xf0] sm:$0xff]   ;;  %v1368_v42 = vld [vmem:[#allocation10 + $0xf8] sm:$0xff]   ;;  %v1066_v60 = vld [vmem:[%s1789_s5] ss:$0 sm:$0xff]  ;;  %s1553_s5 = smov [#allocation11]  }
  0x66   :  { %286 = vmatprep.subr.bf16.mxu0 %v1351_v15  ;;  %1177 = vmatprep.subr.bf16.mxu1 %v1551_v14  ;;  %v1373_v24 = vld [vmem:[#allocation10 + $0x10] sm:$0xff]   ;;  %v1376_v27 = vld [vmem:[#allocation10 + $0x118] sm:$0xff]   ;;  %v1395_v48 = vld [vmem:[#allocation10 + $0xa8] sm:$0xff]   ;;  %s1040_s15 = sshll.u32 %s1553_s5, 4  ;;  %s1041_s15 = int_to_ptr.vmem [resolvable:$true] %s1040_s15 }
  0x67   :  { %316 = vmatprep.mubr.bf16.mxu0 %v1550_v0  ;;  %1179 = vmatprep.mubr.msk.bf16.mxu1 %vm1552_vm1, %v1551_v14  ;;  %v1390_v43 = vld [vmem:[#allocation10 + $0x150] sm:$0xff]   ;;  %v1391_v44 = vld [vmem:[#allocation10 + $0x98] sm:$0xff]   ;;  %s1511_s16 = scalar_lea.vmem %s1041_s15, 128  ;;  %p1516_p13 = scmp.lt.s32.totalorder %s1041_s15, %s1041_s15 }
  0x68   :  { %v1398_v51 = vld [vmem:[#allocation10 + $0x170] sm:$0xff]   ;;  %p1512_p12 = scmp.ne.s32.totalorder %s1041_s15, %s1511_s16  ;;  %p1517_p0 = scmp.lt.s32.totalorder %s1511_s16, %s1511_s16 }
  0x69   :  { %287 = vmatpush1.bf16.msra.mxu0 %v1349_v17  ;;  %1178 = vmatpush3.bf16.msra.mxu1 %v1352_v18  ;;  %v1369_v17 = vld [vmem:[#allocation10] sm:$0xff]  }
  0x6a   :  { %1183 = vmatprep.subr.bf16.mxu1 %v1551_v14  ;;  %1243 = vmatprep.subr.bf16.mxu0 %v1551_v14  ;;  %v1370_v18 = vld [vmem:[#allocation10 + $0x100] sm:$0xff]   ;;  %p1518_p1 = por %p1517_p0, %p1516_p13 }
  0x6c   :  { %1065 = vmatmul.mubr.msk.bf16.vlgmr.msra.gmra.mrb[4].mxu0 %vm198_vm0, %v93_v11  ;;  %1180 = vmatmul.mubr.msk.bf16.vlgmr.msra.gmra.mrb[4].mxu1 %vm198_vm0, %v326_v21  ;;  %p1519_p2 = pnand %p1518_p1, %p1512_p12 }
  0x6d   :  { %1184 = vmatpush3.bf16.msra.mxu1 %v1353_v22  ;;  %1244 = vmatpush3.bf16.msra.mxu0 %v1354_v23  ;;  %v1371_v22 = vld [vmem:[#allocation10 + $0x8] sm:$0xff]  }
  0x6e   :  { %1185 = vmatprep.subr.bf16.mxu1 %v1551_v14  ;;  %1245 = vmatprep.subr.bf16.mxu0 %v1551_v14  ;;  %v1372_v23 = vld [vmem:[#allocation10 + $0x108] sm:$0xff]  }
  0x6f   :  { %1199 = vmatprep.mubr.msk.bf16.mxu1 %vm1552_vm1, %v1551_v14  ;;  %1259 = vmatprep.mubr.msk.bf16.mxu0 %vm1552_vm1, %v1551_v14 }
  0x71   :  { %1186 = vmatpush3.bf16.msra.mxu1 %v1355_v25  ;;  %1246 = vmatpush3.bf16.msra.mxu0 %v1356_v26  ;;  %v1374_v25 = vld [vmem:[#allocation10 + $0x110] sm:$0xff]   ;;  %v1375_v26 = vld [vmem:[#allocation10 + $0x18] sm:$0xff]  }
  0x72   :  { %1187 = vmatprep.subr.bf16.mxu1 %v1551_v14  ;;  %1247 = vmatprep.subr.bf16.mxu0 %v1551_v14 }
  0x75   :  { %1188 = vmatpush3.bf16.msra.mxu1 %v1357_v29  ;;  %1248 = vmatpush3.bf16.msra.mxu0 %v1358_v30  ;;  %v1378_v29 = vld [vmem:[#allocation10 + $0x120] sm:$0xff]   ;;  %v1379_v30 = vld [vmem:[#allocation10 + $0x28] sm:$0xff]  }
  0x76   :  { %1189 = vmatprep.subr.bf16.mxu1 %v1551_v14  ;;  %1249 = vmatprep.subr.bf16.mxu0 %v1551_v14 }
  0x79   :  { %1190 = vmatpush3.bf16.msra.mxu1 %v1359_v31  ;;  %1250 = vmatpush3.bf16.msra.mxu0 %v1360_v32  ;;  %v1380_v31 = vld [vmem:[#allocation10 + $0x128] sm:$0xff]   ;;  %v1381_v32 = vld [vmem:[#allocation10 + $0x30] sm:$0xff]  }
  0x7a   :  { %1191 = vmatprep.subr.bf16.mxu1 %v1551_v14  ;;  %1251 = vmatprep.subr.bf16.mxu0 %v1551_v14 }
  0x7d   :  { %1192 = vmatpush3.bf16.msra.mxu1 %v1361_v33  ;;  %1252 = vmatpush3.bf16.msra.mxu0 %v1362_v34  ;;  %v1382_v33 = vld [vmem:[#allocation10 + $0x130] sm:$0xff]   ;;  %v1383_v34 = vld [vmem:[#allocation10 + $0x38] sm:$0xff]  }
  0x7e   :  { %1193 = vmatprep.subr.bf16.mxu1 %v1551_v14  ;;  %1253 = vmatprep.subr.bf16.mxu0 %v1551_v14 }
  0x81   :  { %1194 = vmatpush3.bf16.msra.mxu1 %v1363_v35  ;;  %1254 = vmatpush3.bf16.msra.mxu0 %v1364_v36  ;;  %v1384_v35 = vld [vmem:[#allocation10 + $0x138] sm:$0xff]   ;;  %v1385_v36 = vld [vmem:[#allocation10 + $0x80] sm:$0xff]  }
  0x82   :  { %1195 = vmatprep.subr.bf16.mxu1 %v1551_v14  ;;  %1255 = vmatprep.subr.bf16.mxu0 %v1551_v14 }
  0x85   :  { %1196 = vmatpush3.bf16.msra.mxu1 %v1365_v37  ;;  %1256 = vmatpush3.bf16.msra.mxu0 %v1366_v38  ;;  %v1386_v37 = vld [vmem:[#allocation10 + $0x140] sm:$0xff]  }
  0x86   :  { %1197 = vmatprep.subr.bf16.mxu1 %v1551_v14  ;;  %1257 = vmatprep.subr.bf16.mxu0 %v1551_v14 }
  0x89   :  { %1198 = vmatpush3.bf16.msra.mxu1 %v1367_v41  ;;  %1258 = vmatpush3.bf16.msra.mxu0 %v1368_v42  ;;  %v1388_v41 = vld [vmem:[#allocation10 + $0x148] sm:$0xff]   ;;  %v1389_v42 = vld [vmem:[#allocation10 + $0x90] sm:$0xff]  }
  0x8a   :  { %1203 = vmatprep.subr.bf16.mxu1 %v1551_v14  ;;  %1263 = vmatprep.subr.bf16.mxu0 %v1551_v14 }
 0x137   :  { %v277_v45 = vpop.f32.mrb[0].mxu1  ;;  %v236_v46 = vpop.f32.mrb[0].mxu0 }
 0x138   :  { %v278_v47 = vadd.f32 %v277_v45, %v119_v28  ;;  %v279_v49 = vpop.f32.mrb[1].mxu1  ;;  %v238_v50 = vpop.f32.mrb[1].mxu0  ;;  %v237_v61 = vadd.f32 %v236_v46, %v111_v55  ;;  %v1377_v28 = vld [vmem:[#allocation10 + $0x20] sm:$0xff]   ;;  %v1392_v45 = vld [vmem:[#allocation10 + $0x158] sm:$0xff]  }
 0x139   :  { %v281_v52 = vpop.f32.mrb[2].mxu1  ;;  %v240_v53 = vpop.f32.mrb[2].mxu0  ;;  %v239_v62 = vadd.f32 %v238_v50, %v115_v56  ;;  %v280_v1 = vadd.f32 %v279_v49, %v123_v58  ;;  %v1393_v46 = vld [vmem:[#allocation10 + $0xa0] sm:$0xff]   ;;  %v1396_v49 = vld [vmem:[#allocation10 + $0x168] sm:$0xff]   ;;  %v1397_v50 = vld [vmem:[#allocation10 + $0xb0] sm:$0xff]  }
 0x13a   :  { %v282_v54 = vpop.f32.mrb[3].mxu1  ;;  %v241_v57 = vpop.f32.mrb[3].mxu0  ;;  %v1399_v52 = vld [vmem:[#allocation10 + $0xb8] sm:$0xff]  }
 0x13b   :  { %v1400_v53 = vld [vmem:[#allocation10 + $0x178] sm:$0xff]  }
 0x13f   :  { %v318_v63 = vpop.f32.mrb[4].mxu0  ;;  %v387_v0 = vpop.f32.mrb[4].mxu1 }
 0x140   :  { %v319_v2 = vadd.f32 %v318_v63, %v127_v59  ;;  %v388_v3 = vadd.f32 %v1066_v60, %v387_v0  ;;  %v320_v4 = vpop.f32.mrb[5].mxu0  ;;  %v1181_v5 = vpop.f32.mrb[5].mxu1 }
 0x141   :  { %v321_v6 = vadd.f32 %v320_v4, %v131_v40  ;;  %v390_v7 = vpop.f32.mrb[6].mxu1  ;;  %v322_v8 = vpop.f32.mrb[6].mxu0  ;;  %v1387_v40 = vld [vmem:[#allocation10 + $0x88] sm:$0xff]  }
 0x142   :  { %v1182_v9 = vpop.f32.mrb[7].mxu1  ;;  %v411_v10 = vmul.f32 %v388_v3, %v239_v62  ;;  %v712_v11 = vmul.f32 %v388_v3, %v280_v1  ;;  %v323_v12 = vpop.f32.mrb[7].mxu0  ;;  %v393_v13 = vmul.f32 %v388_v3, %v237_v61  ;;  %v819_v15 = vmul.f32 %v388_v3, %v319_v2 }
 0x143   :  { %v1726_v16 = vmul.f32 %v388_v3, %v321_v6  ;;  %v1728_v19 = vmul.f32 %v388_v3, %v278_v47  ;;  %v1394_v47 = vld [vmem:[#allocation10 + $0x160] sm:$0xff]  }
 0x144   :  { %v412_v20 = vpack.c.bf16 %v411_v10, %v411_v10  ;;  %v713_v21 = vpack.c.bf16 %v712_v11, %v712_v11  ;;  %v394_v38 = vpack.c.bf16 %v393_v13, %v393_v13  ;;  %v820_v39 = vpack.c.bf16 %v819_v15, %v819_v15 }
 0x145   :  { %v927_v54 = vpack.c.bf16 %v1726_v16, %v1726_v16  ;;  %v606_v55 = vpack.c.bf16 %v1728_v19, %v1728_v19 }
 0x146   :  { %1200 = vmatmul.mubr.bf16.vlgmr.msra.gmra.mrb[8].mxu1 %v412_v20  ;;  %1260 = vmatmul.mubr.bf16.vlgmr.msra.gmra.mrb[8].mxu0 %v713_v21 }
 0x147   :  { %1204 = vmatpush3.bf16.msra.mxu1 %v1369_v17  ;;  %1264 = vmatpush3.bf16.msra.mxu0 %v1370_v18 }
 0x148   :  { %1205 = vmatprep.subr.bf16.mxu1 %v1551_v14  ;;  %1265 = vmatprep.subr.bf16.mxu0 %v1551_v14 }
 0x149   :  { %1219 = vmatprep.mubr.msk.bf16.mxu1 %vm1552_vm1, %v1551_v14  ;;  %1279 = vmatprep.mubr.msk.bf16.mxu0 %vm1552_vm1, %v1551_v14 }
 0x14b   :  { %1206 = vmatpush3.bf16.msra.mxu1 %v1371_v22  ;;  %1266 = vmatpush3.bf16.msra.mxu0 %v1372_v23 }
 0x14c   :  { %1207 = vmatprep.subr.bf16.mxu1 %v1551_v14  ;;  %1267 = vmatprep.subr.bf16.mxu0 %v1551_v14 }
 0x14f   :  { %1208 = vmatpush3.bf16.msra.mxu1 %v1373_v24  ;;  %1268 = vmatpush3.bf16.msra.mxu0 %v1374_v25 }
 0x150   :  { %1209 = vmatprep.subr.bf16.mxu1 %v1551_v14  ;;  %1269 = vmatprep.subr.bf16.mxu0 %v1551_v14 }
 0x153   :  { %1210 = vmatpush3.bf16.msra.mxu1 %v1375_v26  ;;  %1270 = vmatpush3.bf16.msra.mxu0 %v1376_v27 }
 0x154   :  { %1211 = vmatprep.subr.bf16.mxu1 %v1551_v14  ;;  %1271 = vmatprep.subr.bf16.mxu0 %v1551_v14 }
 0x157   :  { %1212 = vmatpush3.bf16.msra.mxu1 %v1377_v28  ;;  %1272 = vmatpush3.bf16.msra.mxu0 %v1378_v29 }
 0x158   :  { %1213 = vmatprep.subr.bf16.mxu1 %v1551_v14  ;;  %1273 = vmatprep.subr.bf16.mxu0 %v1551_v14 }
 0x15b   :  { %1214 = vmatpush3.bf16.msra.mxu1 %v1379_v30  ;;  %1274 = vmatpush3.bf16.msra.mxu0 %v1380_v31 }
 0x15c   :  { %1215 = vmatprep.subr.bf16.mxu1 %v1551_v14  ;;  %1275 = vmatprep.subr.bf16.mxu0 %v1551_v14 }
 0x15f   :  { %1216 = vmatpush3.bf16.msra.mxu1 %v1381_v32  ;;  %1276 = vmatpush3.bf16.msra.mxu0 %v1382_v33 }
 0x160   :  { %1217 = vmatprep.subr.bf16.mxu1 %v1551_v14  ;;  %1277 = vmatprep.subr.bf16.mxu0 %v1551_v14 }
 0x163   :  { %1218 = vmatpush3.bf16.msra.mxu1 %v1383_v34  ;;  %1278 = vmatpush3.bf16.msra.mxu0 %v1384_v35 }
 0x164   :  { %1223 = vmatprep.subr.bf16.mxu1 %v1551_v14  ;;  %1283 = vmatprep.subr.bf16.mxu0 %v1551_v14 }
 0x166   :  { %1220 = vmatmul.mubr.bf16.vlgmr.msra.gmra.mrb[8].mxu1 %v394_v38  ;;  %1280 = vmatmul.mubr.bf16.vlgmr.msra.gmra.mrb[8].mxu0 %v820_v39 }
 0x167   :  { %1224 = vmatpush3.bf16.msra.mxu1 %v1385_v36  ;;  %1284 = vmatpush3.bf16.msra.mxu0 %v1386_v37 }
 0x168   :  { %1225 = vmatprep.subr.bf16.mxu1 %v1551_v14  ;;  %1285 = vmatprep.subr.bf16.mxu0 %v1551_v14 }
 0x169   :  { %1239 = vmatprep.mubr.msk.bf16.mxu1 %vm1552_vm1, %v1551_v14  ;;  %1299 = vmatprep.mubr.msk.bf16.mxu0 %vm1552_vm1, %v1551_v14 }
 0x16b   :  { %1226 = vmatpush3.bf16.msra.mxu1 %v1387_v40  ;;  %1286 = vmatpush3.bf16.msra.mxu0 %v1388_v41 }
 0x16c   :  { %1227 = vmatprep.subr.bf16.mxu1 %v1551_v14  ;;  %1287 = vmatprep.subr.bf16.mxu0 %v1551_v14 }
 0x16f   :  { %1228 = vmatpush3.bf16.msra.mxu1 %v1389_v42  ;;  %1288 = vmatpush3.bf16.msra.mxu0 %v1390_v43 }
 0x170   :  { %1229 = vmatprep.subr.bf16.mxu1 %v1551_v14  ;;  %1289 = vmatprep.subr.bf16.mxu0 %v1551_v14 }
 0x173   :  { %1230 = vmatpush3.bf16.msra.mxu1 %v1391_v44  ;;  %1290 = vmatpush3.bf16.msra.mxu0 %v1392_v45 }
 0x174   :  { %1231 = vmatprep.subr.bf16.mxu1 %v1551_v14  ;;  %1291 = vmatprep.subr.bf16.mxu0 %v1551_v14 }
 0x177   :  { %1232 = vmatpush3.bf16.msra.mxu1 %v1393_v46  ;;  %1292 = vmatpush3.bf16.msra.mxu0 %v1394_v47 }
 0x178   :  { %1233 = vmatprep.subr.bf16.mxu1 %v1551_v14  ;;  %1293 = vmatprep.subr.bf16.mxu0 %v1551_v14 }
 0x17b   :  { %1234 = vmatpush3.bf16.msra.mxu1 %v1395_v48  ;;  %1294 = vmatpush3.bf16.msra.mxu0 %v1396_v49 }
 0x17c   :  { %1235 = vmatprep.subr.bf16.mxu1 %v1551_v14  ;;  %1295 = vmatprep.subr.bf16.mxu0 %v1551_v14 }
 0x17f   :  { %1236 = vmatpush3.bf16.msra.mxu1 %v1397_v50  ;;  %1296 = vmatpush3.bf16.msra.mxu0 %v1398_v51 }
 0x180   :  { %1237 = vmatprep.subr.bf16.mxu1 %v1551_v14  ;;  %1297 = vmatprep.subr.bf16.mxu0 %v1551_v14 }
 0x183   :  { %1238 = vmatpush3.bf16.msra.mxu1 %v1399_v52  ;;  %1298 = vmatpush3.bf16.msra.mxu0 %v1400_v53 }
 0x186   :  { %1240 = vmatmul.mubr.bf16.vlgmr.msra.gmra.mrb[8].mxu1 %v606_v55  ;;  %1300 = vmatmul.mubr.bf16.vlgmr.msra.gmra.mrb[8].mxu0 %v927_v54 }
 0x259   :  { %v705_v56 = vpop.f32.mrb[8].mxu1  ;;  %v1026_v57 = vpop.f32.mrb[8].mxu0 }
 0x25a   :  { %v1303_v58 = vadd.f32 %v1026_v57, %v705_v56  ;;  %v1241_v59 = vpop.f32.mrb[9].mxu1  ;;  %v1301_v60 = vpop.f32.mrb[9].mxu0 }
 0x25b   :  { %v708_v61 = vpop.f32.mrb[10].mxu1  ;;  %v1029_v14 = vpop.f32.mrb[10].mxu0 }
 0x25c   :  { %1033 = vst [vmem:[#allocation11] sm:$0xff] %v1303_v58  ;;  %v1242_v62 = vpop.f32.mrb[11].mxu1  ;;  %v1302_v63 = vpop.f32.mrb[11].mxu0 }
 0x25d   :  { %1522 = shalt.err (!%p1519_p2)
}
 0x25e   :  { %s1523_s19 = scalar_lea.hbm %s1791_s7, 128 }
 0x25f   :  { %p1524_p3 = scmp.ne.s32.totalorder %s1791_s7, %s1523_s19  ;;  %p1527_p4 = scmp.lt.u32.totalorder %s1523_s19, %s1791_s7 }
 0x261   :  { %p1529_p5 = pnand %p1527_p4, %p1524_p3 }
 0x263   :  { %1532 = shalt.err (!%p1529_p5)
}
 0x264   :  { %1043 = dma.vmem_to_hbm [thread:$0]  %s1041_s15, 128, %s1791_s7, [#allocation4]  }
 0x265   :  { %1539 = dma.done.wait [#allocation4], 128  }
 0x266   :  { %1540 = vsyncadd [#allocation4], 4294967168 }
 0x267   :  { %1047 = vsyncpa [#allocation3], 1 }
 0x268   :  { %1048 = vsyncpa [#allocation6], 1 }
 0x269   :  { %1049 = vsyncpa [#allocation9], 1 }
 0x26a   :  { %1050 = vsyncpa [#allocation4], 1 }

</bundles_post_ra>
